<compile_context>
chip_gen: v7x
topology: tpu7x:2x2x1
jax: 0.10.0
libtpu: 0.0.40
codegen_flags: <defaults>
</compile_context>

<pallas_src>
import jax
import jax.numpy as jnp
from jax import lax
from jax.experimental import pallas as pl
from jax.experimental.pallas import tpu as pltpu


# ----------------------------- Pallas kernel -------------------------------- #
def _moe_kernel(fetch_ref, x_ref, gw_ref, w1_ref, w3_ref, w2_ref, o_ref, acc_ref):
    i = pl.program_id(0)          # token tile
    e = pl.program_id(1)          # expert (0 == shared-experts MLP)
    c = pl.program_id(2)          # inter-dim chunk
    n_e = pl.num_programs(1)
    n_c = pl.num_programs(2)

    @pl.when(jnp.logical_and(e == 0, c == 0))
    def _init():
        acc_ref[...] = jnp.zeros_like(acc_ref)

    # Only compute when this expert actually has routed tokens in this tile
    # (fetch[i, e] == e).  Skipped experts also skip their weight DMA because
    # their index_map returns the previous block index.
    @pl.when(fetch_ref[i, e] == e)
    def _compute():
        xb = x_ref[...].astype(jnp.bfloat16)
        a1 = jnp.dot(xb, w1_ref[0], preferred_element_type=jnp.float32)
        a3 = jnp.dot(xb, w3_ref[0], preferred_element_type=jnp.float32)
        h = (a1 * lax.logistic(a1)) * a3                       # silu(w1 x) * w3 x
        ye = jnp.dot(h.astype(jnp.bfloat16), w2_ref[0],
                     preferred_element_type=jnp.float32)       # (tm, dim) chunk
        acc_ref[...] += ye * gw_ref[0]                         # gw: (tm, 1)

    @pl.when(jnp.logical_and(e == n_e - 1, c == n_c - 1))
    def _finalize():
        o_ref[...] = acc_ref[...].astype(o_ref.dtype)


# --------------------------- planning helpers -------------------------------- #
def _choose_tm(T):
    """Token-tile size: prefer >= 2 tiles (keeps both v7x TCs busy), mult of 8."""
    for cand in (256, 128, 64, 32, 16, 8):
        if T >= 2 * cand:
            return cand
    return 8


def _plan_inter(inter_max, dim, budget_bytes=24 << 20):
    """(padded inter, inter_tile): keep double-buffered bf16 W1+W3+W2 blocks
    under ~budget_bytes so tiling also fits v7x's 64 MiB VMEM."""
    if inter_max < 128:
        return inter_max, inter_max          # single full-extent chunk (lane rule ok)
    inter_pad = ((inter_max + 127) // 128) * 128
    max_tile = max(128, budget_bytes // (2 * 3 * dim * 2))
    for cand in (1024, 512, 256, 128):
        if cand <= max_tile and inter_pad % cand == 0:
            return inter_pad, cand
    return inter_pad, 128


def _vmem_limit_bytes(tm, dim, inter_tile):
    f32, bf16 = 4, 2
    per_step = (tm * dim * f32                       # x block
                + tm * f32                           # gate block
                + 2 * dim * inter_tile * bf16        # W1, W3 blocks
                + inter_tile * dim * bf16            # W2 block
                + tm * dim * f32)                    # out block
    total = 2 * per_step + tm * dim * f32 + (2 << 20)   # double-buffer + acc + slack
    return int(min(max(total, 8 << 20), 64 << 20))


# ------------------------------ pallas_call ---------------------------------- #
def _moe_pallas(fetch, x_tok, gate_all, W1, W3, W2, *, tm, inter_tile):
    """fetch: (n_tiles, E_tot) i32; x_tok: (T, dim) f32;
    gate_all: (E_tot, T, 1) f32; W1/W3: (E_tot, dim, inter) bf16;
    W2: (E_tot, inter, dim) bf16."""
    T, dim = x_tok.shape
    E_tot, _, inter = W1.shape
    n_tiles = T // tm
    n_chunks = inter // inter_tile

    def x_map(i, e, c, fetch_ref):
        return (i, 0)

    def gw_map(i, e, c, fetch_ref):
        return (e, i, 0)

    def w13_map(i, e, c, fetch_ref):
        fe = fetch_ref[i, e]
        # Skipped experts keep the previously fetched block resident -> no DMA.
        return (fe, 0, jnp.where(fe == e, c, n_chunks - 1))

    def w2_map(i, e, c, fetch_ref):
        fe = fetch_ref[i, e]
        return (fe, jnp.where(fe == e, c, n_chunks - 1), 0)

    def o_map(i, e, c, fetch_ref):
        return (i, 0)

    return pl.pallas_call(
        _moe_kernel,
        out_shape=jax.ShapeDtypeStruct((T, dim), x_tok.dtype),
        grid_spec=pltpu.PrefetchScalarGridSpec(
            num_scalar_prefetch=1,
            grid=(n_tiles, E_tot, n_chunks),
            in_specs=[
                pl.BlockSpec((tm, dim), x_map),                 # x (resident per tile)
                pl.BlockSpec((1, tm, 1), gw_map),               # gate weights
                pl.BlockSpec((1, dim, inter_tile), w13_map),    # W1 chunk
                pl.BlockSpec((1, dim, inter_tile), w13_map),    # W3 chunk
                pl.BlockSpec((1, inter_tile, dim), w2_map),     # W2 chunk
            ],
            out_specs=pl.BlockSpec((tm, dim), o_map),
            scratch_shapes=[pltpu.VMEM((tm, dim), jnp.float32)],
        ),
        compiler_params=pltpu.CompilerParams(
            dimension_semantics=("parallel", "arbitrary", "arbitrary"),
            vmem_limit_bytes=_vmem_limit_bytes(tm, dim, inter_tile)),
    )(fetch, x_tok, gate_all, W1, W3, W2)


# ------------------------------ MoE wrapper ---------------------------------- #
def moe_forward(x, params, *, topk=1, route_scale=1.0, score_func="softmax",
                tm=None, inter_tile=None):
    """x: (..., dim).  Reproduces MoE.forward (softmax gate, no bias,
    n_expert_groups=1) with the shared-experts MLP added in."""
    gate_w = params["gate_w"].astype(jnp.float32)
    E, dim = gate_w.shape
    orig_shape = x.shape
    xt = x.reshape(-1, dim).astype(jnp.float32)
    T = xt.shape[0]

    # --- Gate (tiny, plain-JAX glue) ---
    scores = jnp.dot(xt, gate_w.T)
    if score_func == "softmax":
        scores = jax.nn.softmax(scores, axis=-1)
    else:
        scores = jax.nn.sigmoid(scores)
    weights, indices = lax.top_k(scores, topk)
    if score_func == "sigmoid":
        weights = weights / jnp.sum(weights, axis=-1, keepdims=True)
    weights = weights * route_scale
    onehot = jax.nn.one_hot(indices, E, dtype=jnp.float32)          # (T, k, E)
    combined = jnp.einsum("tk,tke->te", weights, onehot)            # (T, E)
    routed = jnp.sum(onehot, axis=1) > 0                            # (T, E) bool

    # --- Token tiling (pad T to a multiple of tm) ---
    if tm is None:
        tm = _choose_tm(T)
    n_tiles = pl.cdiv(T, tm)
    T_pad = n_tiles * tm
    if T_pad != T:
        xt = jnp.pad(xt, ((0, T_pad - T), (0, 0)))
        combined = jnp.pad(combined, ((0, T_pad - T), (0, 0)))
        routed = jnp.pad(routed, ((0, T_pad - T), (0, 0)))

    # --- Expert weights: fold shared MLP in as expert 0, bf16, pad inter ---
    W1, W3, W2 = params["W1"], params["W3"], params["W2"]
    Ws1, Ws3, Ws2 = params["Ws1"], params["Ws3"], params["Ws2"]
    inter_max = max(W1.shape[2], Ws1.shape[1])
    inter_pad, it = _plan_inter(inter_max, dim)
    if inter_tile is not None:
        it = inter_tile
        inter_pad = pl.cdiv(inter_max, it) * it

    def pad_last(w):
        return jnp.pad(w, [(0, 0)] * (w.ndim - 1) + [(0, inter_pad - w.shape[-1])])

    def pad_axis(w, axis):
        cfg = [(0, 0)] * w.ndim
        cfg[axis] = (0, inter_pad - w.shape[axis])
        return jnp.pad(w, cfg)

    W1_all = jnp.concatenate([pad_last(Ws1)[None], pad_last(W1)], 0).astype(jnp.bfloat16)
    W3_all = jnp.concatenate([pad_last(Ws3)[None], pad_last(W3)], 0).astype(jnp.bfloat16)
    W2_all = jnp.concatenate([pad_axis(Ws2, 0)[None], pad_axis(W2, 1)], 0).astype(jnp.bfloat16)
    E_tot = E + 1

    # --- Combined gate weights (shared expert gets weight 1.0) ---
    gate_all = jnp.concatenate([jnp.ones((T_pad, 1), jnp.float32), combined], axis=1)
    gate_all = jnp.transpose(gate_all)[:, :, None]                  # (E_tot, T_pad, 1)

    # --- Per-(tile, expert) fetch table: last active expert index <= e ---
    tile_has = routed.reshape(n_tiles, tm, E).any(axis=1)            # (n_tiles, E)
    active = jnp.concatenate(
        [jnp.ones((n_tiles, 1), dtype=jnp.bool_), tile_has], axis=1)  # shared always on
    idx = jnp.where(active, jnp.arange(E_tot, dtype=jnp.int32)[None, :], 0)
    fetch = lax.cummax(idx, axis=1).astype(jnp.int32)                # (n_tiles, E_tot)

    # TODO(synk): for very large prefill, an expert-outer grid (stream each
    # expert's weights once, accumulate into HBM via input_output_aliases)
    # would further cut weight bandwidth.
    y = _moe_pallas(fetch, xt, gate_all, W1_all, W3_all, W2_all,
                    tm=tm, inter_tile=it)
    return y[:T].astype(x.dtype).reshape(orig_shape)


# -------------------------- pure-JAX reference ------------------------------- #
def moe_reference(x, params, *, topk=1, route_scale=1.0):
    gate_w = params["gate_w"].astype(jnp.float32)
    E, dim = gate_w.shape
    orig_shape = x.shape
    xt = x.reshape(-1, dim).astype(jnp.float32)
    scores = jax.nn.softmax(jnp.dot(xt, gate_w.T), axis=-1)
    weights, indices = lax.top_k(scores, topk)
    weights = weights * route_scale

    silu = lambda v: v * jax.nn.sigmoid(v)
    W1 = params["W1"].astype(jnp.float32)
    W3 = params["W3"].astype(jnp.float32)
    W2 = params["W2"].astype(jnp.float32)
    Ws1 = params["Ws1"].astype(jnp.float32)
    Ws3 = params["Ws3"].astype(jnp.float32)
    Ws2 = params["Ws2"].astype(jnp.float32)

    y = jnp.zeros_like(xt)
    for e in range(E):
        h = silu(xt @ W1[e]) * (xt @ W3[e])
        ye = h @ W2[e]
        gw = jnp.sum(jnp.where(indices == e, weights, 0.0), axis=-1, keepdims=True)
        y = y + ye * gw
    z = (silu(xt @ Ws1) * (xt @ Ws3)) @ Ws2
    return (y + z).astype(x.dtype).reshape(orig_shape)


# --------------------------------- main --------------------------------------- #
if __name__ == "__main__":
    # Small config consistent with ModelArgs (scaled down).
    dim = 32
    moe_inter_dim = 64
    n_routed_experts = 3
    n_shared_experts = 1
    n_activated_experts = 1
    batch, seq = 2, 8                       # T = 16 tokens -> 2 token tiles of tm=8

    key = jax.random.PRNGKey(0)
    ks = jax.random.split(key, 8)
    scale = 0.05
    s_inter = n_shared_experts * moe_inter_dim
    params = {
        # Gate.weight: (n_routed_experts, dim), used as x @ W.T  (kept in f32)
        "gate_w": scale * jax.random.normal(ks[0], (n_routed_experts, dim), jnp.float32),
        # Expert weights, pre-transposed to (in, out), stored in bf16:
        "W1": (scale * jax.random.normal(ks[1], (n_routed_experts, dim, moe_inter_dim),
                                         jnp.float32)).astype(jnp.bfloat16),
        "W3": (scale * jax.random.normal(ks[2], (n_routed_experts, dim, moe_inter_dim),
                                         jnp.float32)).astype(jnp.bfloat16),
        "W2": (scale * jax.random.normal(ks[3], (n_routed_experts, moe_inter_dim, dim),
                                         jnp.float32)).astype(jnp.bfloat16),
        # Shared-experts MLP:
        "Ws1": (scale * jax.random.normal(ks[4], (dim, s_inter), jnp.float32)).astype(jnp.bfloat16),
        "Ws3": (scale * jax.random.normal(ks[5], (dim, s_inter), jnp.float32)).astype(jnp.bfloat16),
        "Ws2": (scale * jax.random.normal(ks[6], (s_inter, dim), jnp.float32)).astype(jnp.bfloat16),
    }
    x = jax.random.normal(ks[7], (batch, seq, dim), jnp.float32)

    out = moe_forward(x, params, topk=n_activated_experts, tm=8)
    out = jax.block_until_ready(out)

    ref = moe_reference(x, params, topk=n_activated_experts)
    assert out.shape == x.shape
    assert jnp.allclose(out, ref, atol=5e-3, rtol=5e-2), "mismatch vs reference"

    print("KERNEL_OK")
</pallas_src>

<mosaic_0001>
module attributes {stable_mosaic.version = 11 : i64} {
  func.func @_moe_kernel(%arg0: i32, %arg1: i32, %arg2: i32, %arg3: memref<2x4xi32, #tpu.memory_space<smem>>, %arg4: memref<8x32xf32, #tpu.memory_space<vmem>>, %arg5: memref<1x8x1xf32, #tpu.memory_space<vmem>>, %arg6: memref<1x32x64xbf16, #tpu.memory_space<vmem>>, %arg7: memref<1x32x64xbf16, #tpu.memory_space<vmem>>, %arg8: memref<1x64x32xbf16, #tpu.memory_space<vmem>>, %arg9: memref<8x32xf32, #tpu.memory_space<vmem>>, %arg10: memref<8x32xf32, #tpu.memory_space<vmem>>) attributes {dimension_semantics = [#tpu.dimension_semantics<parallel>, #tpu.dimension_semantics<arbitrary>, #tpu.dimension_semantics<arbitrary>], iteration_bounds = array<i64: 2, 4, 1>, scalar_prefetch = 1 : i64, scratch_operands = 1 : i64, tpu.core_type = #tpu.core_type<tc>, window_params = [{transform_indices = @transform_0, window_bounds = array<i64: 8, 32>}, {transform_indices = @transform_1, window_bounds = array<i64: 1, 8, 1>}, {transform_indices = @transform_2, window_bounds = array<i64: 1, 32, 64>}, {transform_indices = @transform_3, window_bounds = array<i64: 1, 32, 64>}, {transform_indices = @transform_4, window_bounds = array<i64: 1, 64, 32>}, {transform_indices = @transform_5, window_bounds = array<i64: 8, 32>}]} {
    %c0_i32 = arith.constant 0 : i32
    %0 = arith.cmpi eq, %arg1, %c0_i32 : i32
    %c0_i32_0 = arith.constant 0 : i32
    %1 = arith.cmpi eq, %arg2, %c0_i32_0 : i32
    %2 = arith.andi %0, %1 : i1
    %3 = arith.extui %2 : i1 to i32
    %c0_i32_1 = arith.constant 0 : i32
    %4 = arith.cmpi ne, %3, %c0_i32_1 : i32
    scf.if %4 {
      %cst = arith.constant 0.000000e+00 : f32
      %16 = vector.broadcast %cst : f32 to vector<8x32xf32>
      %c0 = arith.constant 0 : index
      %c0_5 = arith.constant 0 : index
      %17 = vector.load %arg10[%c0, %c0_5] : memref<8x32xf32, #tpu.memory_space<vmem>>, vector<8x32xf32>
      tpu.vector_store %arg10[%c0, %c0_5], %16 {strides = array<i32>} : memref<8x32xf32, #tpu.memory_space<vmem>>, vector<8x32xf32>,
    } else {
    }
    %5 = arith.index_cast %arg0 : i32 to index
    %6 = arith.index_cast %arg1 : i32 to index
    %7 = memref.load %arg3[%5, %6] : memref<2x4xi32, #tpu.memory_space<smem>>
    %8 = arith.cmpi eq, %7, %arg1 : i32
    %9 = arith.extui %8 : i1 to i32
    %c0_i32_2 = arith.constant 0 : i32
    %10 = arith.cmpi ne, %9, %c0_i32_2 : i32
    scf.if %10 {
      %c0 = arith.constant 0 : index
      %c0_5 = arith.constant 0 : index
      %16 = vector.load %arg4[%c0, %c0_5] : memref<8x32xf32, #tpu.memory_space<vmem>>, vector<8x32xf32>
      %17 = arith.truncf %16 : vector<8x32xf32> to vector<8x32xbf16>
      %c0_6 = arith.constant 0 : index
      %c0_7 = arith.constant 0 : index
      %c0_8 = arith.constant 0 : index
      %18 = vector.load %arg6[%c0_6, %c0_7, %c0_8] : memref<1x32x64xbf16, #tpu.memory_space<vmem>>, vector<1x32x64xbf16>
      %19 = vector.shape_cast %18 : vector<1x32x64xbf16> to vector<32x64xbf16>
      %cst = arith.constant dense<0.000000e+00> : vector<8x64xf32>
      %20 = tpu.matmul %17, %19, %cst {dimension_numbers = #tpu.dot_dimension_numbers<[1], [0], [0], [1], [0, 0, 1, 1], [], []>} : vector<8x32xbf16>, vector<32x64xbf16>, vector<8x64xf32> -> vector<8x64xf32>
      %c0_9 = arith.constant 0 : index
      %c0_10 = arith.constant 0 : index
      %c0_11 = arith.constant 0 : index
      %21 = vector.load %arg7[%c0_9, %c0_10, %c0_11] : memref<1x32x64xbf16, #tpu.memory_space<vmem>>, vector<1x32x64xbf16>
      %22 = vector.shape_cast %21 : vector<1x32x64xbf16> to vector<32x64xbf16>
      %cst_12 = arith.constant dense<0.000000e+00> : vector<8x64xf32>
      %23 = tpu.matmul %17, %22, %cst_12 {dimension_numbers = #tpu.dot_dimension_numbers<[1], [0], [0], [1], [0, 0, 1, 1], [], []>} : vector<8x32xbf16>, vector<32x64xbf16>, vector<8x64xf32> -> vector<8x64xf32>
      %24 = arith.negf %20 : vector<8x64xf32>
      %25 = math.exp %24 : vector<8x64xf32>
      %cst_13 = arith.constant 1.000000e+00 : f32
      %26 = vector.broadcast %cst_13 : f32 to vector<8x64xf32>
      %27 = arith.addf %26, %25 : vector<8x64xf32>
      %28 = arith.divf %26, %27 : vector<8x64xf32>
      %29 = arith.mulf %20, %28 : vector<8x64xf32>
      %30 = arith.mulf %29, %23 : vector<8x64xf32>
      %31 = arith.truncf %30 : vector<8x64xf32> to vector<8x64xbf16>
      %c0_14 = arith.constant 0 : index
      %c0_15 = arith.constant 0 : index
      %c0_16 = arith.constant 0 : index
      %32 = vector.load %arg8[%c0_14, %c0_15, %c0_16] : memref<1x64x32xbf16, #tpu.memory_space<vmem>>, vector<1x64x32xbf16>
      %33 = vector.shape_cast %32 : vector<1x64x32xbf16> to vector<64x32xbf16>
      %cst_17 = arith.constant dense<0.000000e+00> : vector<8x32xf32>
      %34 = tpu.matmul %31, %33, %cst_17 {dimension_numbers = #tpu.dot_dimension_numbers<[1], [0], [0], [1], [0, 0, 1, 1], [], []>} : vector<8x64xbf16>, vector<64x32xbf16>, vector<8x32xf32> -> vector<8x32xf32>
      %c0_18 = arith.constant 0 : index
      %c0_19 = arith.constant 0 : index
      %35 = vector.load %arg10[%c0_18, %c0_19] : memref<8x32xf32, #tpu.memory_space<vmem>>, vector<8x32xf32>
      %c0_20 = arith.constant 0 : index
      %c0_21 = arith.constant 0 : index
      %c0_22 = arith.constant 0 : index
      %36 = vector.load %arg5[%c0_20, %c0_21, %c0_22] : memref<1x8x1xf32, #tpu.memory_space<vmem>>, vector<1x8x1xf32>
      %37 = vector.shape_cast %36 : vector<1x8x1xf32> to vector<8x1xf32>
      %38 = vector.broadcast %37 : vector<8x1xf32> to vector<8x32xf32>
      %39 = arith.mulf %34, %38 : vector<8x32xf32>
      %40 = arith.addf %35, %39 : vector<8x32xf32>
      %c0_23 = arith.constant 0 : index
      %c0_24 = arith.constant 0 : index
      %41 = vector.load %arg10[%c0_23, %c0_24] : memref<8x32xf32, #tpu.memory_space<vmem>>, vector<8x32xf32>
      tpu.vector_store %arg10[%c0_23, %c0_24], %40 {strides = array<i32>} : memref<8x32xf32, #tpu.memory_space<vmem>>, vector<8x32xf32>,
    } else {
    }
    %c3_i32 = arith.constant 3 : i32
    %11 = arith.cmpi eq, %arg1, %c3_i32 : i32
    %c0_i32_3 = arith.constant 0 : i32
    %12 = arith.cmpi eq, %arg2, %c0_i32_3 : i32
    %13 = arith.andi %11, %12 : i1
    %14 = arith.extui %13 : i1 to i32
    %c0_i32_4 = arith.constant 0 : i32
    %15 = arith.cmpi ne, %14, %c0_i32_4 : i32
    scf.if %15 {
      %c0 = arith.constant 0 : index
      %c0_5 = arith.constant 0 : index
      %16 = vector.load %arg10[%c0, %c0_5] : memref<8x32xf32, #tpu.memory_space<vmem>>, vector<8x32xf32>
      %c0_6 = arith.constant 0 : index
      %c0_7 = arith.constant 0 : index
      %17 = vector.load %arg9[%c0_6, %c0_7] : memref<8x32xf32, #tpu.memory_space<vmem>>, vector<8x32xf32>
      tpu.vector_store %arg9[%c0_6, %c0_7], %16 {strides = array<i32>} : memref<8x32xf32, #tpu.memory_space<vmem>>, vector<8x32xf32>,
    } else {
    }
    return
  }
  func.func @transform_0(%arg0: i32, %arg1: i32, %arg2: i32, %arg3: memref<2x4xi32, #tpu.memory_space<smem>>) -> (i32, i32) {
    %c0_i32 = arith.constant 0 : i32
    %c0_i32_0 = arith.constant 0 : i32
    return %arg0, %c0_i32 : i32, i32
  }
  func.func @transform_1(%arg0: i32, %arg1: i32, %arg2: i32, %arg3: memref<2x4xi32, #tpu.memory_space<smem>>) -> (i32, i32, i32) {
    %c0_i32 = arith.constant 0 : i32
    %c0_i32_0 = arith.constant 0 : i32
    return %arg1, %arg0, %c0_i32 : i32, i32, i32
  }
  func.func @transform_2(%arg0: i32, %arg1: i32, %arg2: i32, %arg3: memref<2x4xi32, #tpu.memory_space<smem>>) -> (i32, i32, i32) {
    %0 = arith.index_cast %arg0 : i32 to index
    %1 = arith.index_cast %arg1 : i32 to index
    %2 = memref.load %arg3[%0, %1] : memref<2x4xi32, #tpu.memory_space<smem>>
    %3 = arith.cmpi eq, %2, %arg1 : i32
    %c0_i32 = arith.constant 0 : i32
    %4 = arith.select %3, %arg2, %c0_i32 : i32
    %c0_i32_0 = arith.constant 0 : i32
    %c0_i32_1 = arith.constant 0 : i32
    return %2, %c0_i32_0, %4 : i32, i32, i32
  }
  func.func @transform_3(%arg0: i32, %arg1: i32, %arg2: i32, %arg3: memref<2x4xi32, #tpu.memory_space<smem>>) -> (i32, i32, i32) {
    %0 = arith.index_cast %arg0 : i32 to index
    %1 = arith.index_cast %arg1 : i32 to index
    %2 = memref.load %arg3[%0, %1] : memref<2x4xi32, #tpu.memory_space<smem>>
    %3 = arith.cmpi eq, %2, %arg1 : i32
    %c0_i32 = arith.constant 0 : i32
    %4 = arith.select %3, %arg2, %c0_i32 : i32
    %c0_i32_0 = arith.constant 0 : i32
    %c0_i32_1 = arith.constant 0 : i32
    return %2, %c0_i32_0, %4 : i32, i32, i32
  }
  func.func @transform_4(%arg0: i32, %arg1: i32, %arg2: i32, %arg3: memref<2x4xi32, #tpu.memory_space<smem>>) -> (i32, i32, i32) {
    %0 = arith.index_cast %arg0 : i32 to index
    %1 = arith.index_cast %arg1 : i32 to index
    %2 = memref.load %arg3[%0, %1] : memref<2x4xi32, #tpu.memory_space<smem>>
    %3 = arith.cmpi eq, %2, %arg1 : i32
    %c0_i32 = arith.constant 0 : i32
    %4 = arith.select %3, %arg2, %c0_i32 : i32
    %c0_i32_0 = arith.constant 0 : i32
    %c0_i32_1 = arith.constant 0 : i32
    return %2, %4, %c0_i32_0 : i32, i32, i32
  }
  func.func @transform_5(%arg0: i32, %arg1: i32, %arg2: i32, %arg3: memref<2x4xi32, #tpu.memory_space<smem>>) -> (i32, i32) {
    %c0_i32 = arith.constant 0 : i32
    %c0_i32_0 = arith.constant 0 : i32
    return %arg0, %c0_i32 : i32, i32
  }
}

</mosaic_0001>

<bundles_post_ra>
// kernel: tpu_custom_call.1
= control target key start
LH: loop header
LB: loop body
LE: loop exit
PB: predicated region body
PF: predicated region fallthrough
CT: control target
= control target key end

     0   :  { %s1495_s0 = inlined_call_operand.vmem [shape: s32[2,4], index: 0, kind: input, shape index: {}]   ;;  %s1496_s1 = inlined_call_operand.vmem [shape: f32[16,32], index: 1, kind: input, shape index: {}]   ;;  %s1497_s2 = inlined_call_operand.vmem [shape: f32[4,16,1], index: 2, kind: input, shape index: {}]   ;;  %s1498_s3 = inlined_call_operand.vmem [shape: bf16[4,32,64], index: 3, kind: input, shape index: {}]   ;;  %s1499_s4 = inlined_call_operand.vmem [shape: bf16[4,32,64], index: 4, kind: input, shape index: {}]   ;;  %s1500_s5 = inlined_call_operand.vmem [shape: bf16[4,64,32], index: 5, kind: input, shape index: {}]   ;;  %s1501_s6 = inlined_call_operand.hbm [shape: f32[16,32], index: 6, kind: output, shape index: {}]  }
   0x1   :  { %s11_s23 = sshll.u32 %s1495_s0, 4  ;;  %s12_s23 = int_to_ptr.vmem [resolvable:$true] %s11_s23 }
   0x2   :  { %s1163_s24 = scalar_lea.vmem %s12_s23, 32  ;;  %p1168_p1 = scmp.lt.s32.totalorder %s12_s23, %s12_s23 }
   0x3   :  { %p1164_p0 = scmp.ne.s32.totalorder %s12_s23, %s1163_s24  ;;  %p1169_p2 = scmp.lt.s32.totalorder %s1163_s24, %s1163_s24 }
   0x5   :  { %p1170_p3 = por %p1169_p2, %p1168_p1 }
   0x7   :  { %p1171_p4 = pnand %p1170_p3, %p1164_p0 }
   0x9   :  { %1174 = shalt.err (!%p1171_p4)  }
   0xa   :  { %s1273_s25 = smov [#allocation4]  }
   0xb   :  { %14 = dma.vmem_to_smem %s12_s23, 32, %s1273_s25, [#allocation3] }
   0xc   :  { %1235 = dma.done.wait [#allocation3], 32 }
   0xd   :  { %1236 = vsyncadd [#allocation3], 4294967264 }
   0xe   :  { %16 = sfence }
   0xf   :  { %17 = vsyncpa [#allocation6], 0 }
  0x10   :  { %19 = vsyncpa [#allocation6 + $0x1], 0  ;;  %s1317_s26 = smov 0   ;;  %s1319_s27 = smov 0  }
  0x11   :  { %s1321_s0 = smov 0   ;;  %s1323_s28 = smov 0  }
  0x12   :  { %s1325_s29 = smov 0   ;;  %s1327_s30 = smov 0  }
  0x13   :  { %s1329_s7 = smov 0   ;;  %s1331_s8 = smov 0  }
  0x14 LB: > { %1509 = sst [smem:[#allocation9_spill]] %s1243_s26  ;;  %s986_s9 = sadd.s32 4294967295, %s1271_s8   ;;  %s1271_s8 = sphi %s1331_s8, %s25_s8   ;;  %s1267_s7 = sphi %s1329_s7, %s1527_s7   ;;  %s1263_s30 = sphi %s1327_s30, %s1526_s30   ;;  %s1259_s29 = sphi %s1325_s29, %s1525_s29   ;;  %s1255_s28 = sphi %s1323_s28, %s1524_s28   ;;  %s1251_s0 = sphi %s1321_s0, %s1530_s0   ;;  %s1247_s27 = sphi %s1319_s27, %s1529_s27   ;;  %s1243_s26 = sphi %s1317_s26, %s1528_s26  }
  0x15   : > { %1510 = sst [smem:[#allocation10_spill]] %s1251_s0  ;;  %s987_s10 = sadd.s32 4294967294, %s1271_s8  }
  0x16   : > { %1511 = sst [smem:[#allocation11_spill]] %s1263_s30  ;;  %s40_s11 = sadd.s32 1, %s1263_s30 }
  0x17   : > { %1512 = sst [smem:[#allocation12_spill]] %s1267_s7  ;;  %p42_p5 = scmp.ge.s32.totalorder %s40_s11, 4 }
  0x18   : > { %s44_s12 = sadd.s32 1, %s1267_s7  ;;  %p259_p6 = scmp.ne.s32.totalorder %s1251_s0, %s1247_s27 }
  0x19   : > { %p260_p7 = scmp.eq.s32.totalorder %s986_s9, 7  ;;  %s1532_s11 = smov (%p42_p5, %s40_s11), 0 }
  0x1a   : > { %1513 = sst [smem:[#allocation13_spill]] %s1532_s11  ;;  %s1534_s12 = smov (!%p42_p5, %s44_s12), %s1267_s7 }
  0x1b   : > { %p1366_p8 = por %p260_p7, %p259_p6  ;;  %p265_p9 = scmp.ne.s32.totalorder %s1247_s27, %s1243_s26 }
  0x1c   : > { %p46_p10 = scmp.ge.s32.totalorder %s1534_s12, 2  ;;  %p266_p11 = scmp.eq.s32.totalorder %s987_s10, 7 }
  0x1d   : > { %p996_p12 = scmp.ge.s32.totalorder %s1271_s8, 1  ;;  %p397_p13 = scmp.lt.s32.totalorder %s1271_s8, 9 }
  0x1e   : > { %s1536_s12 = smov (%p46_p10, %s1534_s12), 0  ;;  %p1376_p0 = por %p266_p11, %p265_p9 }
  0x1f   : > { %1515 = sst [smem:[#allocation14_spill]] %s1536_s12  ;;  %p398_p1 = pnand %p996_p12, %p397_p13 }
  0x20   : > { %s1516_s14 = scalar_select %p1376_p0, 1, 0 }
  0x21   : > { %s246_s15 = ssub.s32 %s1267_s7, %s1536_s12  ;;  %s249_s16 = sadd.s32 1, %s1251_s0 }
  0x22   : > { %1517 = sst [smem:[#allocation15_spill]] %s1516_s14  ;;  %p247_p2 = scmp.eq.s32.totalorder %s246_s15, 0 }
  0x23   : > { %401 = sbr.rel (%p398_p1) target bundleno = 571 (0x23b), region = 40  ;;  %s1505_s18 = sand.u32 (!%p398_p1), 1, %s1247_s27  }
  0x24   : > { %s1384_s17 = scalar_select %p247_p2, %s1251_s0, %s249_s16  }
  0x25   : > { %p487_p3 = scmp.lt.s32.totalorder (!%p398_p1), %s1259_s29, 1  ;;  %s1390_s19 = sshll.u32 (!%p398_p1), %s1505_s18, 3 }
  0x26   : > { %1518 = sst [smem:[#allocation16_spill]] %s1384_s17  ;;  %p491_p4 = scmp.lt.s32.totalorder (!%p398_p1), %s1255_s28, 3 }
  0x27   : > { %s499_s20 = sshra.s32 (!%p398_p1), %s1255_s28, 7  ;;  %s504_s7 = sand.u32 (!%p398_p1), 127, %s1255_s28 }
  0x28   : > { %s501_s24 = sadd.s32 (!%p398_p1), %s1259_s29, %s499_s20  ;;  %p586_p5 = scmp.eq.s32.totalorder (!%p398_p1), %s1255_s28, 0 }
  0x29   : > { %s1001_s12 = sshll.u32 (!%p398_p1), %s501_s24, 7 }
  0x2a   : > { %s488_s21 = scalar_select %p487_p3, %s1259_s29, 1 }
  0x2b   : > { %s492_s22 = scalar_select %p491_p4, %s1255_s28, 3 }
  0x2c   : > { %s998_s23 = sshll.u32 %s488_s21, 3  ;;  %s505_s0 = sadd.s32 %s1001_s12, %s504_s7  ;;  %vm592_vm0 = vcmask (%p586_p5), 261120   ;;  %v1274_v0 = vmov (%p586_p5), 0.0  }
  0x2d   : > { %s1400_s10 = scalar_lea.vmem %s1496_s1, %s998_s23  ;;  %s999_s15 = sshll.u32 %s492_s22, 1  ;;  %593 = vst.msk [vmem:[#allocation2] sm:$0xff] (%p586_p5), %vm592_vm0, %v1274_v0 }
  0x2e   : > { %s496_s16 = sadd.s32 %s999_s15, %s488_s21  ;;  %s506_s14 = sld [smem:[#allocation4 + %s505_s0]] }
  0x2f   : > { %s1000_s11 = sshll.u32 %s496_s16, 3  ;;  %s534_s26 = sld [smem:[#allocation4 + %s505_s0]] }
  0x30   : > { %s1406_s17 = scalar_lea.vmem %s1497_s2, %s1000_s11  ;;  %s562_s20 = sld [smem:[#allocation4 + %s505_s0]] }
  0x31   : > { %s486_s16 = scalar_lea.vmem [#allocation5], %s1390_s19 }
  0x34   : > { %p509_p6 = scmp.lt.s32.totalorder %s506_s14, 3 }
  0x35   : > { %p537_p7 = scmp.lt.s32.totalorder %s534_s26, 3  ;;  %591 = sbr.rel (!%p586_p5) target bundleno = 60 (0x3c), region = 44 }
  0x36   : > { %p566_p9 = scmp.lt.s32.totalorder %s562_s20, 3  ;;  %s1538_s14 = smov (!%p509_p6, %s506_s14), 3 }
  0x37   : > { %s1540_s26 = smov (!%p537_p7, %s534_s26), 3  ;;  %s1030_s21 = sshll.u32 %s1538_s14, 4 }
  0x38   : > { %s516_s24 = scalar_lea.vmem %s1498_s3, %s1030_s21  ;;  %s1031_s25 = sshll.u32 %s1540_s26, 4 }
  0x39   : > { %s1415_s7 = scalar_lea.vmem %s1499_s4, %s1031_s25  ;;  %s1542_s20 = smov (!%p566_p9, %s562_s20), 3 }
  0x3a   : > { %s1032_s12 = sshll.u32 %s1542_s20, 5 }
  0x3b   : > { %s1420_s15 = scalar_lea.vmem %s1500_s5, %s1032_s12 }
  0x3c PF: > { %s601_s26 = sld [smem:[#allocation4 + %s505_s0]] }
  0x42   : > { %p1012_p10 = scmp.ne.s32.totalorder %s601_s26, %s1255_s28 }
  0x43   : > { %v1151_v1 = vld [vmem:[%s516_s24] sm:$0xff] (!%p1012_p10)   ;;  %v1275_v2 = vmov (!%p1012_p10), 0.0   ;;  %v1152_v3 = vld [vmem:[%s516_s24 + $0x8] sm:$0xff] (!%p1012_p10)   ;;  %vm1276_vm1 = vmmov (!%p1012_p10), 0   ;;  %vm624_vm2 = vcmask (!%p1012_p10), 261120   ;;  %v1157_v10 = vld [vmem:[%s1420_s15 + $0x10] sm:$0xff] (!%p1012_p10)  }
  0x44   : > { %605 = sbr.rel (%p1012_p10) target bundleno = 537 (0x219), region = 48  ;;  %1046 = vmatprep.subr.bf16.mxu1 (!%p1012_p10), %v1275_v2  ;;  %1062 = vmatprep.subr.bf16.mxu0 (!%p1012_p10), %v1275_v2  ;;  %v606_v4 = vld [vmem:[%s1400_s10] sm:$0xff] (!%p1012_p10)  ;;  %v1154_v7 = vld [vmem:[%s1415_s7 + $0x8] sm:$0xff] (!%p1012_p10)   ;;  %v1158_v11 = vld [vmem:[%s1420_s15 + $0x18] sm:$0xff] (!%p1012_p10)   ;;  %v1277_v13 = vmov (!%p1012_p10), 0   ;;  %vm765_vm3 = vcmask (!%p1012_p10), 523264  }
  0x45   : > { %1047 = vmatpush3.bf16.msra.mxu1 (!%p1012_p10), %v1151_v1  ;;  %1050 = vmatprep.mubr.msk.bf16.mxu1 (!%p1012_p10), %vm1276_vm1, %v1275_v2  ;;  %v1153_v5 = vld [vmem:[%s1415_s7] sm:$0xff] (!%p1012_p10)   ;;  %v607_v6 = vpack.c.bf16 (!%p1012_p10), %v606_v4, %v606_v4  ;;  %v1156_v9 = vld [vmem:[%s1420_s15 + $0x8] sm:$0xff] (!%p1012_p10)  }
  0x46   : > { %1048 = vmatprep.subr.bf16.mxu1 (!%p1012_p10), %v1275_v2  ;;  %1070 = vmatprep.mubr.msk.bf16.mxu0 (!%p1012_p10), %vm1276_vm1, %v1275_v2  ;;  %v1155_v8 = vld [vmem:[%s1420_s15] sm:$0xff] (!%p1012_p10)  }
  0x47   : > { %1063 = vmatpush3.bf16.msra.mxu0 (!%p1012_p10), %v1155_v8  ;;  %v810_v12 = vld [vmem:[%s1406_s17] sm:$0xff] (!%p1012_p10)  ;;  %1150 = vset.pattern.permute.xlu0 (!%p1012_p10), %v1277_v13 }
  0x48   : > { %1064 = vmatprep.subr.bf16.mxu0 (!%p1012_p10), %v1275_v2  ;;  %813 = vperm.xlu0 (!%p1012_p10), %1150, %v810_v12   ;;  %v809_v31 = vld [vmem:[#allocation2] sm:$0xff] (!%p1012_p10) }
  0x49   : > { %1049 = vmatpush3.bf16.msra.mxu1 (!%p1012_p10), %v1152_v3 }
  0x4a   : > { %1054 = vmatprep.subr.bf16.mxu1 (!%p1012_p10), %v1275_v2 }
  0x4b   : > { %1065 = vmatpush3.bf16.msra.mxu0 %v1156_v9 }
  0x4c   : > { %1051 = vmatmul.mubr.msk.bf16.vlgmr.msra.gmra.mrb[0].mxu1 %vm624_vm2, %v607_v6  ;;  %1066 = vmatprep.subr.bf16.mxu0 %v1275_v2 }
  0x4d   : > { %1055 = vmatpush3.bf16.msra.mxu1 %v1153_v5  ;;  %1058 = vmatprep.mubr.msk.bf16.mxu1 %vm1276_vm1, %v1275_v2 }
  0x4e   : > { %1056 = vmatprep.subr.bf16.mxu1 %v1275_v2 }
  0x4f   : > { %1067 = vmatpush3.bf16.msra.mxu0 %v1157_v10 }
  0x50   : > { %1068 = vmatprep.subr.bf16.mxu0 %v1275_v2 }
  0x51   : > { %1057 = vmatpush3.bf16.msra.mxu1 %v1154_v7 }
  0x53   : > { %1069 = vmatpush3.bf16.msra.mxu0 %v1158_v11 }
  0x54   : > { %1059 = vmatmul.mubr.msk.bf16.vlgmr.msra.gmra.mrb[4].mxu1 %vm624_vm2, %v607_v6 }
  0xc7   : > { %v814_v29 = vpop.permute.xlu0 %813 }
 0x11f   : > { %v662_v14 = vpop.f32.mrb[0].mxu1 }
 0x120   : > { %v1019_v15 = vmul.f32 -1.442695, %v662_v14  ;;  %v1052_v16 = vpop.f32.mrb[1].mxu1 }
 0x121   : > { %v665_v17 = vpop.f32.mrb[2].mxu1 }
 0x122   : > { %1159 = vpow2.f32 %v1019_v15  ;;  %v1053_v18 = vpop.f32.mrb[3].mxu1 }
 0x127   : > { %v718_v19 = vpop.f32.mrb[4].mxu1 }
 0x128   : > { %v1060_v20 = vpop.f32.mrb[5].mxu1 }
 0x129   : > { %v721_v21 = vpop.f32.mrb[6].mxu1 }
 0x12a   : > { %v1061_v22 = vpop.f32.mrb[7].mxu1 }
 0x12c   : > { %v1160_v23 = vpop.eup %1159 }
 0x12d   : > { %v727_v24 = vadd.f32 1.0, %v1160_v23 }
 0x12f   : > { %1161 = vrcp.f32 %v727_v24 }
 0x139   : > { %v1162_v25 = vpop.eup %1161 }
 0x13a   : > { %v730_v26 = vmul.f32 %v1162_v25, %v662_v14 }
 0x13c   : > { %v731_v27 = vmul.f32 %v730_v26, %v718_v19 }
 0x13e   : > { %v732_v28 = vpack.c.bf16 %v731_v27, %v731_v27 }
 0x140   : > { %1071 = vmatmul.mubr.msk.bf16.vlgmr.msra.gmra.mrb[0].mxu0 %vm765_vm3, %v732_v28 }
 0x213   : > { %v803_v30 = vpop.f32.mrb[0].mxu0 }
 0x214   : > { %v816_v32 = vmul.f32 %v814_v29, %v803_v30  ;;  %v1072_v33 = vpop.f32.mrb[1].mxu0 }
 0x215   : > { %v806_v34 = vpop.f32.mrb[2].mxu0 }
 0x216   : > { %v817_v35 = vadd.f32 %v816_v32, %v809_v31  ;;  %v1073_v36 = vpop.f32.mrb[3].mxu0 }
 0x218   : > { %818 = vst.msk [vmem:[#allocation2] sm:$0xff] %vm624_vm2, %v817_v35 }
 0x219 PF: > { %p819_p11 = scmp.eq.s32.totalorder %s1255_s28, 3 }
 0x21a   : > { %vm825_vm4 = vcmask (%p819_p11), 261120  }
 0x21b   : > { %823 = sbr.rel (!%p819_p11) target bundleno = 546 (0x222), region = 52 }
 0x21f   : > { %v824_v37 = vld [vmem:[#allocation2] sm:$0xff] (%p819_p11) }
 0x220   : > { %826 = vst.msk [vmem:[%s486_s16] sm:$0xff] (%p819_p11), %vm825_vm4, %v824_v37 }
 0x222 PF: > { %s1027_s0 = sshll.u32 %s1259_s29, 7  ;;  %s841_s20 = sshll.u32 %s486_s16, 4  ;;  %s842_s20 = int_to_ptr.vmem [resolvable:$true] %s841_s20 }
 0x223   : > { %s1444_s10 = scalar_lea.hbm %s1501_s6, %s1027_s0  ;;  %s1519_s28 = sand.u32 1, %s1247_s27  }
 0x224   : > { %s828_s21 = scalar_lea.sflag [#allocation6], %s1519_s28  ;;  %s1175_s22 = scalar_lea.vmem %s842_s20, 128 }
 0x225   : > { %p1176_p12 = scmp.ne.s32.totalorder %s842_s20, %s1175_s22  ;;  %s1278_s23 = smov [#allocation5]  }
 0x226   : > { %s1179_s24 = sshll.u32 %s1278_s23, 4  ;;  %s1180_s24 = int_to_ptr.vmem [resolvable:$false] %s1179_s24 }
 0x227   : > { %p1177_p13 = pnand %p1176_p12, %p1366_p8  ;;  %s1181_s25 = scalar_lea.vmem %s1180_s24, 256 }
 0x228   : > { %p1182_p2 = scmp.lt.s32.totalorder %s842_s20, %s1180_s24  ;;  %p1183_p3 = scmp.lt.s32.totalorder %s1181_s25, %s1175_s22 }
 0x229   : > { %p1178_p1 = pneg %p1177_p13 }
 0x22a   : > { %p1184_p4 = por %p1183_p3, %p1182_p2 }
 0x22c   : > { %p1185_p5 = pnand %p1184_p4, %p1178_p1 }
 0x22e   : > { %1188 = shalt.err (!%p1185_p5)
}
 0x22f   : > { %s1189_s29 = scalar_lea.hbm %s1444_s10, 128  ;;  %s1193_s11 = scalar_lea.hbm %s1501_s6, 256 }
 0x230   : > { %p1190_p6 = scmp.ne.s32.totalorder %s1444_s10, %s1189_s29  ;;  %p1194_p10 = scmp.lt.u32.totalorder %s1444_s10, %s1501_s6 }
 0x231   : > { %p1195_p11 = scmp.lt.u32.totalorder %s1193_s11, %s1189_s29  ;;  %p1197_p13 = scmp.lt.u32.totalorder %s1189_s29, %s1444_s10 }
 0x232   : > { %p1191_p7 = pnand %p1190_p6, %p1366_p8 }
 0x233   : > { %p1196_p12 = por %p1195_p11, %p1194_p10 }
 0x234   : > { %p1192_p9 = pneg %p1191_p7 }
 0x235   : > { %p1198_p1 = por %p1197_p13, %p1196_p12 }
 0x237   : > { %p1199_p2 = pnand %p1198_p1, %p1192_p9 }
 0x239   : > { %1202 = shalt.err (!%p1199_p2)
}
 0x23a   : > { %1074 = dma.vmem_to_hbm [thread:$0]  (%p1366_p8), %s842_s20, 128, %s1444_s10, %s828_s21  }
 0x23b PF: > { %s1520_s18 = sld [smem:[#allocation9_spill]]  ;;  %p1080_p3 = scmp.ge.s32.totalorder %s1271_s8, 2 }
 0x23d   : > { %p1077_p4 = pnand %p1080_p3, %p1376_p0 }
 0x241   : > { %s853_s15 = sand.u32 1, %s1520_s18  }
 0x242   : > { %s854_s16 = scalar_lea.sflag [#allocation6], %s853_s15 }
 0x243   : > { %1238 = dma.done.wait (!%p1077_p4), %s854_s16, 128  }
 0x244   : > { %1240 = vsyncadd (!%p1077_p4), %s854_s16, 4294967168  ;;  %s25_s8 = sadd.s32 1, %s1271_s8   ;;  %s1522_s0 = sld [smem:[#allocation10_spill]] }
 0x245   : > { %p22_p5 = scmp.ge.s32.totalorder %s25_s8, 10   ;;  %s1523_s14 = sld [smem:[#allocation16_spill]] }
 0x246   : > { %s1524_s28 = sld [smem:[#allocation11_spill]]  ;;  %s1525_s29 = sld [smem:[#allocation12_spill]] }
 0x247   : > { %s1526_s30 = sld [smem:[#allocation13_spill]]  ;;  %s1527_s7 = sld [smem:[#allocation14_spill]] }
 0x248   : > { %s1528_s26 = smov %s1247_s27  ;;  %24 = sbr.rel (!%p22_p5) target bundleno = 20 (0x14), region = 99 }
 0x24a   : > { %s1529_s27 = smov %s1522_s0 }
 0x24b   : > { %s1530_s0 = smov %s1523_s14 }
 0x24f   :  { %859 = vsyncpa [#allocation6], 1 }
 0x250   :  { %861 = vsyncpa [#allocation6 + $0x1], 1 }

</bundles_post_ra>
